<compile_context>
chip_gen: v7x
topology: tpu7x:2x2x1
jax: 0.10.0
libtpu: 0.0.40
codegen_flags: <defaults>
</compile_context>

<pallas_src>
import math

import jax
import jax.numpy as jnp
from jax import lax
from jax.experimental import pallas as pl
from jax.experimental.pallas import tpu as pltpu

_NEG_BIG = -1e30   # additive mask bias; must equal the running-max init (fully-masked tiles)
_LN_EPS = 1e-5


# --------------------------------------------------------------------------------------
# Hardware-aware knobs
# --------------------------------------------------------------------------------------
def _vmem_limit_bytes():
    """Scoped-VMEM budget: 64 MiB on v5e/v6e (128 MiB physical), 32 MiB on v7x (64 MiB)."""
    try:
        cap = int(pltpu.get_tpu_info().vmem_capacity_bytes)
        return min(64 * 1024 * 1024, cap // 2)
    except Exception:
        return 32 * 1024 * 1024


def _exp_dtype():
    """bf16 exp on chips with a bf16 EUP (v6e/v7x); f32 on v2-v5 (no bf16 EUP/VPU)."""
    try:
        kind = jax.devices()[0].device_kind.lower()
    except Exception:
        return jnp.float32
    if any(tag in kind for tag in ("v2", "v3", "v4", "v5")):
        return jnp.float32
    return jnp.bfloat16


def _round_up(n, q):
    return ((n + q - 1) // q) * q


def _choose_tile(n, target, quantum):
    num_tiles = max(1, math.ceil(n / max(target, quantum)))
    tile = _round_up(math.ceil(n / num_tiles), quantum)
    return tile, num_tiles


def _estimate_vmem_bytes(tq, tk, din, dk, dv, learned):
    f32, b16 = 4, 2
    est = 2 * tq * din * f32                                   # query block (double-buffered)
    if learned:
        est += 2 * tk * dk * b16 + 2 * tk * (dv + 1) * b16     # learned k / v_aug blocks
    else:
        est += 2 * 2 * tk * din * f32                          # key + value blocks (worst case)
    est += 2 * 8 * tk * f32                                    # keep-mask block (sublane padded)
    est += 2 * tq * dv * f32                                   # output block
    est += tq * dk * b16 + tq * f32 + tq * (dv + 1) * f32      # scratch (q, m, acc)
    est += 8 * din * max(dk, dv + 1) * b16 + (64 << 10)        # weights + slack
    return est


def _select_tiles(batch, nq, nk, din, dk, dv, *, q_tile_target, k_tile_target, learned):
    """Pick (TQ, TK) against the per-generation scoped-VMEM budget and keep >= 2 parallel
    (b, qi) tiles so v7x's 2 TensorCores both get work."""
    budget = int(0.6 * _vmem_limit_bytes())
    tq, ntq = _choose_tile(nq, q_tile_target, 8)
    tk, ntk = _choose_tile(nk, k_tile_target, 128)
    for _ in range(32):
        if _estimate_vmem_bytes(tq, tk, din, dk, dv, learned) <= budget:
            break
        if tk > 128:
            tk = max(128, _round_up(tk // 2, 128))
            ntk = math.ceil(nk / tk)
        elif tq > 8:
            tq = max(8, _round_up(tq // 2, 8))
            ntq = math.ceil(nq / tq)
        else:
            break
    if batch * ntq < 2 and nq > 8:     # megacore occupancy (2 TCs shard the parallel axes)
        tq = _round_up(math.ceil(nq / 2), 8)
        ntq = 2
    return tq, ntq, tk, ntk


# --------------------------------------------------------------------------------------
# One-time parameter preparation (transpose / cast / fold scale / augment value weights)
# --------------------------------------------------------------------------------------
def prepare_attention_params(params, compute_dtype=jnp.bfloat16):
    """Pre-transpose + pre-cast weights to bf16, fold 1/sqrt(Dk) into the query projection,
    and append a zeros-column / unit-bias to the value projection so the p @ v_aug MXU
    matmul also produces the f32 softmax denominator (row-sums of p)."""
    wq = jnp.asarray(params["wq"], jnp.float32)                 # (Dk, Din)
    dk = wq.shape[0]
    scale = 1.0 / math.sqrt(dk)
    prepared = {
        "_prepared": True,
        "wq_t": (wq.T * scale).astype(compute_dtype),           # (Din, Dk)
        "bq": (jnp.asarray(params["bq"], jnp.float32) * scale).reshape(1, dk),
        "gamma": jnp.asarray(params["gamma"], jnp.float32).reshape(1, -1),
        "beta": jnp.asarray(params["beta"], jnp.float32).reshape(1, -1),
    }
    if "l_keys" in params:   # learn_key_val path: keys/values are parameters, no projection
        lv = jnp.asarray(params["l_vals"], jnp.float32)
        prepared["l_keys"] = jnp.asarray(params["l_keys"], jnp.float32).astype(compute_dtype)
        prepared["l_vals_aug"] = jnp.concatenate(
            [lv, jnp.ones((lv.shape[0], 1), jnp.float32)], axis=1).astype(compute_dtype)
    else:
        wk = jnp.asarray(params["wk"], jnp.float32)             # (Dk, Din)
        wv = jnp.asarray(params["wv"], jnp.float32)             # (Dv, Din)
        dv, din = wv.shape
        prepared["wk_t"] = wk.T.astype(compute_dtype)
        prepared["bk"] = jnp.asarray(params["bk"], jnp.float32).reshape(1, dk)
        prepared["wv_aug_t"] = jnp.concatenate(
            [wv.T, jnp.zeros((din, 1), jnp.float32)], axis=1).astype(compute_dtype)
        prepared["bv_aug"] = jnp.concatenate(
            [jnp.asarray(params["bv"], jnp.float32), jnp.ones((1,), jnp.float32)]
        ).reshape(1, dv + 1)
    return prepared


# --------------------------------------------------------------------------------------
# Kernel pieces
# --------------------------------------------------------------------------------------
def _project(x_ref, w_ref, b_ref, compute_dtype):
    """y = x @ W + b on the MXU (f32 accumulate), returned in the MXU input dtype."""
    x = x_ref[...].astype(compute_dtype)
    y = lax.dot_general(x, w_ref[...], (((1,), (0,)), ((), ())),
                        preferred_element_type=jnp.float32) + b_ref[...]
    return y.astype(compute_dtype)


def _init_state(xq_ref, wq_ref, bq_ref, q_sc, m_sc, acc_sc, compute_dtype):
    # Project q once per (b, qi) tile; 1/sqrt(Dk) is already folded into wq/bq.
    q_sc[...] = _project(xq_ref, wq_ref, bq_ref, compute_dtype)
    m_sc[...] = jnp.full_like(m_sc, _NEG_BIG)
    acc_sc[...] = jnp.zeros_like(acc_sc)


def _softmax_step(q, k, v_aug, keep, m_sc, acc_sc, exp_dtype, compute_dtype):
    """Online-softmax update for one (TQ, TK) score tile.

    * 1/sqrt(Dk) is folded into q, so s = q @ k^T directly (last dims contracted, no k^T).
    * Mask is an additive bias (no compare/select); the `* keep` multiply is load-bearing:
      on a fully-masked tile m stays at _NEG_BIG and exp(s - m) = 1 on masked columns.
    * exp runs in bf16 on v6e/v7x; all exp arguments are <= 0 so no overflow path exists.
    * v_aug carries a constant-1 column, so the p @ v_aug MXU matmul yields both the
      numerator and the f32 denominator (row-sums of p) with no XLU reduce of p.
    """
    s = lax.dot_general(q, k, (((1,), (1,)), ((), ())),
                        preferred_element_type=jnp.float32)            # (TQ, TK)
    s = s + (1.0 - keep) * _NEG_BIG
    m_prev = m_sc[...]
    m_new = jnp.maximum(m_prev, jnp.max(s, axis=1, keepdims=True))     # (TQ, 1)
    alpha = jnp.exp(m_prev - m_new)                                    # <= 1, never inf
    p = jnp.exp((s - m_new).astype(exp_dtype)) * keep.astype(exp_dtype)
    pv = lax.dot_general(p.astype(compute_dtype), v_aug, (((1,), (0,)), ((), ())),
                         preferred_element_type=jnp.float32)           # (TQ, Dv+1)
    m_sc[...] = m_new
    acc_sc[...] = alpha * acc_sc[...] + pv


def _finalize(acc_sc, gamma_ref, beta_ref, o_ref, ln_eps, value_dim):
    acc = acc_sc[...]                                  # (TQ, Dv+1) = [numerator | denominator]
    num = acc[:, :value_dim]
    den = acc[:, value_dim:]
    den = jnp.where(den == 0.0, 1.0, den)              # fully-masked rows -> 0 attn -> LN -> beta
    attn = num * pl.reciprocal(den, approx=True)       # EUP reciprocal (~2^-12 rel error)
    # Fused LayerNorm over the value dim (torch.nn.LayerNorm(value_dim), eps=1e-5).
    mu = jnp.mean(attn, axis=-1, keepdims=True)
    xc = attn - mu
    var = jnp.mean(xc * xc, axis=-1, keepdims=True)
    y = xc * lax.rsqrt(var + ln_eps) * gamma_ref[...] + beta_ref[...]
    o_ref[...] = y.astype(o_ref.dtype)


def _make_kernel(mode, *, ln_eps, exp_dtype, compute_dtype, value_dim):
    if mode == "proj_shared":      # key is value (e.g. self-attention): one kv input stream
        def kernel(xq_ref, xkv_ref, keep_ref, wq_ref, bq_ref, wk_ref, bk_ref,
                   wv_ref, bv_ref, gamma_ref, beta_ref, o_ref, q_sc, m_sc, acc_sc):
            ki = pl.program_id(2)

            @pl.when(ki == 0)
            def _():
                _init_state(xq_ref, wq_ref, bq_ref, q_sc, m_sc, acc_sc, compute_dtype)

            k = _project(xkv_ref, wk_ref, bk_ref, compute_dtype)
            v_aug = _project(xkv_ref, wv_ref, bv_ref, compute_dtype)
            _softmax_step(q_sc[...], k, v_aug, keep_ref[...], m_sc, acc_sc,
                          exp_dtype, compute_dtype)

            @pl.when(ki == pl.num_programs(2) - 1)
            def _():
                _finalize(acc_sc, gamma_ref, beta_ref, o_ref, ln_eps, value_dim)
        return kernel

    if mode == "proj":             # distinct key / value inputs
        def kernel(xq_ref, xk_ref, xv_ref, keep_ref, wq_ref, bq_ref, wk_ref, bk_ref,
                   wv_ref, bv_ref, gamma_ref, beta_ref, o_ref, q_sc, m_sc, acc_sc):
            ki = pl.program_id(2)

            @pl.when(ki == 0)
            def _():
                _init_state(xq_ref, wq_ref, bq_ref, q_sc, m_sc, acc_sc, compute_dtype)

            k = _project(xk_ref, wk_ref, bk_ref, compute_dtype)
            v_aug = _project(xv_ref, wv_ref, bv_ref, compute_dtype)
            _softmax_step(q_sc[...], k, v_aug, keep_ref[...], m_sc, acc_sc,
                          exp_dtype, compute_dtype)

            @pl.when(ki == pl.num_programs(2) - 1)
            def _():
                _finalize(acc_sc, gamma_ref, beta_ref, o_ref, ln_eps, value_dim)
        return kernel

    def kernel(xq_ref, k_ref, v_ref, keep_ref, wq_ref, bq_ref,       # learned keys/values
               gamma_ref, beta_ref, o_ref, q_sc, m_sc, acc_sc):
        ki = pl.program_id(2)

        @pl.when(ki == 0)
        def _():
            _init_state(xq_ref, wq_ref, bq_ref, q_sc, m_sc, acc_sc, compute_dtype)

        _softmax_step(q_sc[...], k_ref[...], v_ref[...], keep_ref[...], m_sc, acc_sc,
                      exp_dtype, compute_dtype)

        @pl.when(ki == pl.num_programs(2) - 1)
        def _():
            _finalize(acc_sc, gamma_ref, beta_ref, o_ref, ln_eps, value_dim)
    return kernel


# --------------------------------------------------------------------------------------
# Fused attention + LayerNorm wrapper (projections, online softmax and LN in one kernel)
# --------------------------------------------------------------------------------------
def _pad_seq3(x, n_pad):
    return x if x.shape[1] == n_pad else jnp.pad(x, ((0, 0), (0, n_pad - x.shape[1]), (0, 0)))


def _pad_seq2(x, n_pad):
    return x if x.shape[0] == n_pad else jnp.pad(x, ((0, n_pad - x.shape[0]), (0, 0)))


def _const_spec(shape):
    return pl.BlockSpec(shape, lambda b, qi, ki: (0, 0))


def fused_attention_layernorm(prepared, query, key, value, mask, *,
                              q_tile_target=512, k_tile_target=2048,
                              compute_dtype=jnp.bfloat16, ln_eps=_LN_EPS):
    batch, nq, din = query.shape
    dk = prepared["wq_t"].shape[1]
    dv = prepared["gamma"].shape[1]
    learned = "l_keys" in prepared
    if learned:
        nk = prepared["l_keys"].shape[0]
        mode = "learned"
    else:
        nk = key.shape[1]
        mode = "proj_shared" if key is value else "proj"

    # Key-position keep mask (the PyTorch mask.transpose(1, 2)) as {0, 1} f32.
    if mask is None:
        keep = jnp.ones((batch, 1, nk), jnp.float32)
    else:
        keep = (jnp.transpose(jnp.asarray(mask), (0, 2, 1)) > 0).astype(jnp.float32)

    tq, ntq, tk, ntk = _select_tiles(batch, nq, nk, din, dk, dv,
                                     q_tile_target=q_tile_target,
                                     k_tile_target=k_tile_target, learned=learned)
    nq_pad, nk_pad = tq * ntq, tk * ntk

    query_p = _pad_seq3(query.astype(jnp.float32), nq_pad)
    keep_p = keep if nk_pad == nk else jnp.pad(keep, ((0, 0), (0, 0), (0, nk_pad - nk)))

    if learned:
        k_in = _pad_seq2(prepared["l_keys"], nk_pad)
        v_in = _pad_seq2(prepared["l_vals_aug"], nk_pad)
        inputs = (query_p, k_in, v_in, keep_p,
                  prepared["wq_t"], prepared["bq"], prepared["gamma"], prepared["beta"])
        in_specs = [
            pl.BlockSpec((None, tq, din), lambda b, qi, ki: (b, qi, 0)),
            pl.BlockSpec((tk, dk), lambda b, qi, ki: (ki, 0)),        # batch-agnostic stream
            pl.BlockSpec((tk, dv + 1), lambda b, qi, ki: (ki, 0)),
            pl.BlockSpec((None, 1, tk), lambda b, qi, ki: (b, 0, ki)),
            _const_spec((din, dk)), _const_spec((1, dk)),
            _const_spec((1, dv)), _const_spec((1, dv)),
        ]
    else:
        key_p = _pad_seq3(key.astype(jnp.float32), nk_pad)
        weights = (prepared["wq_t"], prepared["bq"], prepared["wk_t"], prepared["bk"],
                   prepared["wv_aug_t"], prepared["bv_aug"],
                   prepared["gamma"], prepared["beta"])
        weight_specs = [_const_spec((din, dk)), _const_spec((1, dk)),
                        _const_spec((din, dk)), _const_spec((1, dk)),
                        _const_spec((din, dv + 1)), _const_spec((1, dv + 1)),
                        _const_spec((1, dv)), _const_spec((1, dv))]
        if mode == "proj_shared":
            inputs = (query_p, key_p, keep_p) + weights
            in_specs = [
                pl.BlockSpec((None, tq, din), lambda b, qi, ki: (b, qi, 0)),
                pl.BlockSpec((None, tk, din), lambda b, qi, ki: (b, ki, 0)),
                pl.BlockSpec((None, 1, tk), lambda b, qi, ki: (b, 0, ki)),
            ] + weight_specs
        else:
            value_p = _pad_seq3(value.astype(jnp.float32), nk_pad)
            inputs = (query_p, key_p, value_p, keep_p) + weights
            in_specs = [
                pl.BlockSpec((None, tq, din), lambda b, qi, ki: (b, qi, 0)),
                pl.BlockSpec((None, tk, din), lambda b, qi, ki: (b, ki, 0)),
                pl.BlockSpec((None, tk, din), lambda b, qi, ki: (b, ki, 0)),
                pl.BlockSpec((None, 1, tk), lambda b, qi, ki: (b, 0, ki)),
            ] + weight_specs

    kernel = _make_kernel(mode, ln_eps=ln_eps, exp_dtype=_exp_dtype(),
                          compute_dtype=compute_dtype, value_dim=dv)

    out = pl.pallas_call(
        kernel,
        out_shape=jax.ShapeDtypeStruct((batch, nq_pad, dv), jnp.float32),
        grid_spec=pltpu.PrefetchScalarGridSpec(
            num_scalar_prefetch=0,
            grid=(batch, ntq, ntk),
            in_specs=in_specs,
            out_specs=pl.BlockSpec((None, tq, dv), lambda b, qi, ki: (b, qi, 0)),
            scratch_shapes=[
                pltpu.VMEM((tq, dk), compute_dtype),      # projected, pre-scaled q
                pltpu.VMEM((tq, 1), jnp.float32),         # running max
                pltpu.VMEM((tq, dv + 1), jnp.float32),    # running [numerator | denominator]
            ],
        ),
        compiler_params=pltpu.CompilerParams(
            dimension_semantics=("parallel", "parallel", "arbitrary"),
            vmem_limit_bytes=_vmem_limit_bytes(),
        ),
    )(*inputs)
    return out[:, :nq, :] if nq_pad > nq else out


# --------------------------------------------------------------------------------------
# Full AttentionLayer.forward
# --------------------------------------------------------------------------------------
def attention_layer(params, query, key=None, value=None, mask=None, pooling_function=None,
                    q_tile_target=512, k_tile_target=2048):
    """`params` may be the raw PyTorch-style dict or the output of prepare_attention_params
    (weight prep done once and reused across calls)."""
    assert query.ndim == 3
    prepared = params if params.get("_prepared", False) else prepare_attention_params(params)
    if key is None and value is None:
        key = query
        value = query
    out = fused_attention_layernorm(prepared, query, key, value, mask,
                                    q_tile_target=q_tile_target,
                                    k_tile_target=k_tile_target)
    # TODO(synk): optional pooling is a trivial reduction done in plain JAX, not in the kernel.
    if pooling_function == "max":
        out = jnp.max(out, axis=1)
    elif pooling_function == "mean":
        out = jnp.mean(out, axis=1)
    return out


# --------------------------------------------------------------------------------------
# Pure-JAX f32 reference mirroring the PyTorch forward (for validation)
# --------------------------------------------------------------------------------------
def _reference(params, query, key=None, value=None, mask=None, pooling_function=None):
    if key is None and value is None:
        key = query
        value = query
    q = query @ params["wq"].T + params["bq"]
    if "l_keys" in params:
        b = query.shape[0]
        k = jnp.broadcast_to(params["l_keys"][None], (b,) + params["l_keys"].shape)
        v = jnp.broadcast_to(params["l_vals"][None], (b,) + params["l_vals"].shape)
    else:
        k = key @ params["wk"].T + params["bk"]
        v = value @ params["wv"].T + params["bv"]
    s = jnp.einsum("bqd,bkd->bqk", q, k) / jnp.sqrt(jnp.float32(q.shape[-1]))
    if mask is None:
        keep = jnp.ones((s.shape[0], 1, s.shape[2]), dtype=bool)
    else:
        keep = jnp.transpose(mask, (0, 2, 1)) > 0
    s_m = jnp.where(keep, s, -1e30)
    mx = jnp.max(s_m, axis=2, keepdims=True)
    e = jnp.where(keep, jnp.exp(s_m - mx), 0.0)
    den = jnp.sum(e, axis=2, keepdims=True)
    p = e / jnp.where(den == 0.0, 1.0, den)
    o = jnp.einsum("bqk,bkd->bqd", p, v)
    mu = jnp.mean(o, axis=-1, keepdims=True)
    var = jnp.mean((o - mu) ** 2, axis=-1, keepdims=True)
    y = (o - mu) / jnp.sqrt(var + 1e-5) * params["gamma"] + params["beta"]
    if pooling_function == "max":
        y = jnp.max(y, axis=1)
    elif pooling_function == "mean":
        y = jnp.mean(y, axis=1)
    return y


if __name__ == "__main__":
    B, N = 2, 8
    input_dim, key_dim, value_dim = 32, 32, 32

    keys = jax.random.split(jax.random.PRNGKey(0), 16)
    x = jax.random.normal(keys[0], (B, N, input_dim), dtype=jnp.float32)

    def init_linear(kw, kb, dout, din):
        bound = 1.0 / math.sqrt(din)
        w = jax.random.uniform(kw, (dout, din), minval=-bound, maxval=bound, dtype=jnp.float32)
        b = jax.random.uniform(kb, (dout,), minval=-bound, maxval=bound, dtype=jnp.float32)
        return w, b

    wq, bq = init_linear(keys[1], keys[2], key_dim, input_dim)
    wk, bk = init_linear(keys[3], keys[4], key_dim, input_dim)
    wv, bv = init_linear(keys[5], keys[6], value_dim, input_dim)
    gamma = 1.0 + 0.1 * jax.random.normal(keys[7], (value_dim,), dtype=jnp.float32)
    beta = 0.1 * jax.random.normal(keys[8], (value_dim,), dtype=jnp.float32)
    params = dict(wq=wq, bq=bq, wk=wk, bk=bk, wv=wv, bv=bv, gamma=gamma, beta=beta)
    prepared = prepare_attention_params(params)   # weight prep done once, reused across calls

    def check(name, out, ref, tol=5e-2):
        err = float(jnp.max(jnp.abs(out - ref)))
        assert jnp.allclose(out, ref, atol=tol, rtol=tol), (name, err)

    # 1) Self-attention, no mask (shared key/value input stream).
    out1 = attention_layer(prepared, x)
    jax.block_until_ready(out1)
    check("self", out1, _reference(params, x))

    # 2) Distinct key/value with a mask and non-aligned lengths -> exercises key padding and
    #    the multi-tile online softmax (small tile targets force several (qi, ki) steps).
    Nq2, Nk2 = 48, 160
    xq2 = jax.random.normal(keys[9], (B, Nq2, input_dim), dtype=jnp.float32)
    xk2 = jax.random.normal(keys[10], (B, Nk2, input_dim), dtype=jnp.float32)
    xv2 = jax.random.normal(keys[11], (B, Nk2, input_dim), dtype=jnp.float32)
    mask2 = jnp.ones((B, Nk2, 1), dtype=jnp.float32).at[1, 37:, 0].set(0.0)
    out2 = attention_layer(prepared, xq2, key=xk2, value=xv2, mask=mask2,
                           q_tile_target=16, k_tile_target=128)
    jax.block_until_ready(out2)
    check("masked", out2, _reference(params, xq2, key=xk2, value=xv2, mask=mask2))

    # 3) learn_key_val path: un-broadcast (Nk, D) learned keys/values streamed directly.
    n_learn = 10
    l_keys = jax.random.normal(keys[12], (n_learn, key_dim), dtype=jnp.float32)
    l_vals = jax.random.normal(keys[13], (n_learn, value_dim), dtype=jnp.float32)
    params_l = dict(wq=wq, bq=bq, gamma=gamma, beta=beta, l_keys=l_keys, l_vals=l_vals)
    out3 = attention_layer(params_l, x, pooling_function="mean")
    jax.block_until_ready(out3)
    check("learned", out3, _reference(params_l, x, pooling_function="mean"))

    print("KERNEL_OK")
</pallas_src>

<mosaic_0001>
module attributes {stable_mosaic.version = 11 : i64} {
  func.func @kernel(%arg0: i32, %arg1: i32, %arg2: i32, %arg3: memref<1x8x32xf32, #tpu.memory_space<vmem>>, %arg4: memref<1x128x32xf32, #tpu.memory_space<vmem>>, %arg5: memref<1x1x128xf32, #tpu.memory_space<vmem>>, %arg6: memref<32x32xbf16, #tpu.memory_space<vmem>>, %arg7: memref<1x32xf32, #tpu.memory_space<vmem>>, %arg8: memref<32x32xbf16, #tpu.memory_space<vmem>>, %arg9: memref<1x32xf32, #tpu.memory_space<vmem>>, %arg10: memref<32x33xbf16, #tpu.memory_space<vmem>>, %arg11: memref<1x33xf32, #tpu.memory_space<vmem>>, %arg12: memref<1x32xf32, #tpu.memory_space<vmem>>, %arg13: memref<1x32xf32, #tpu.memory_space<vmem>>, %arg14: memref<1x8x32xf32, #tpu.memory_space<vmem>>, %arg15: memref<8x32xbf16, #tpu.memory_space<vmem>>, %arg16: memref<8x1xf32, #tpu.memory_space<vmem>>, %arg17: memref<8x33xf32, #tpu.memory_space<vmem>>) attributes {dimension_semantics = [#tpu.dimension_semantics<parallel>, #tpu.dimension_semantics<parallel>, #tpu.dimension_semantics<arbitrary>], iteration_bounds = array<i64: 2, 1, 1>, scalar_prefetch = 0 : i64, scratch_operands = 3 : i64, tpu.core_type = #tpu.core_type<tc>, window_params = [{transform_indices = @transform_0, window_bounds = array<i64: 1, 8, 32>}, {transform_indices = @transform_1, window_bounds = array<i64: 1, 128, 32>}, {transform_indices = @transform_2, window_bounds = array<i64: 1, 1, 128>}, {pipeline_mode = #tpu.pipeline_mode<synchronous>, transform_indices = @transform_3, window_bounds = array<i64: 32, 32>}, {pipeline_mode = #tpu.pipeline_mode<synchronous>, transform_indices = @transform_4, window_bounds = array<i64: 1, 32>}, {pipeline_mode = #tpu.pipeline_mode<synchronous>, transform_indices = @transform_5, window_bounds = array<i64: 32, 32>}, {pipeline_mode = #tpu.pipeline_mode<synchronous>, transform_indices = @transform_6, window_bounds = array<i64: 1, 32>}, {pipeline_mode = #tpu.pipeline_mode<synchronous>, transform_indices = @transform_7, window_bounds = array<i64: 32, 33>}, {pipeline_mode = #tpu.pipeline_mode<synchronous>, transform_indices = @transform_8, window_bounds = array<i64: 1, 33>}, {pipeline_mode = #tpu.pipeline_mode<synchronous>, transform_indices = @transform_9, window_bounds = array<i64: 1, 32>}, {pipeline_mode = #tpu.pipeline_mode<synchronous>, transform_indices = @transform_10, window_bounds = array<i64: 1, 32>}, {transform_indices = @transform_11, window_bounds = array<i64: 1, 8, 32>}]} {
    %c0_i32 = arith.constant 0 : i32
    %0 = arith.cmpi eq, %arg2, %c0_i32 : i32
    %1 = arith.extui %0 : i1 to i32
    %c0_i32_0 = arith.constant 0 : i32
    %2 = arith.cmpi ne, %1, %c0_i32_0 : i32
    scf.if %2 {
      %c0_35 = arith.constant 0 : index
      %c0_36 = arith.constant 0 : index
      %c0_37 = arith.constant 0 : index
      %54 = vector.load %arg3[%c0_35, %c0_36, %c0_37] : memref<1x8x32xf32, #tpu.memory_space<vmem>>, vector<1x8x32xf32>
      %55 = vector.shape_cast %54 : vector<1x8x32xf32> to vector<8x32xf32>
      %56 = arith.truncf %55 : vector<8x32xf32> to vector<8x32xbf16>
      %c0_38 = arith.constant 0 : index
      %c0_39 = arith.constant 0 : index
      %57 = vector.load %arg6[%c0_38, %c0_39] : memref<32x32xbf16, #tpu.memory_space<vmem>>, vector<32x32xbf16>
      %cst_40 = arith.constant dense<0.000000e+00> : vector<8x32xf32>
      %58 = tpu.matmul %56, %57, %cst_40 {dimension_numbers = #tpu.dot_dimension_numbers<[1], [0], [0], [1], [0, 0, 1, 1], [], []>} : vector<8x32xbf16>, vector<32x32xbf16>, vector<8x32xf32> -> vector<8x32xf32>
      %c0_41 = arith.constant 0 : index
      %c0_42 = arith.constant 0 : index
      %59 = vector.load %arg7[%c0_41, %c0_42] : memref<1x32xf32, #tpu.memory_space<vmem>>, vector<1x32xf32>
      %60 = vector.broadcast %59 : vector<1x32xf32> to vector<8x32xf32>
      %61 = arith.addf %58, %60 : vector<8x32xf32>
      %62 = arith.truncf %61 : vector<8x32xf32> to vector<8x32xbf16>
      %c0_43 = arith.constant 0 : index
      %c0_44 = arith.constant 0 : index
      %63 = vector.load %arg15[%c0_43, %c0_44] : memref<8x32xbf16, #tpu.memory_space<vmem>>, vector<8x32xbf16>
      tpu.vector_store %arg15[%c0_43, %c0_44], %62 {strides = array<i32>} : memref<8x32xbf16, #tpu.memory_space<vmem>>, vector<8x32xbf16>,
      %cst_45 = arith.constant -1.000000e+30 : f32
      %64 = vector.broadcast %cst_45 : f32 to vector<8x1xf32>
      %c0_46 = arith.constant 0 : index
      %c0_47 = arith.constant 0 : index
      %65 = vector.load %arg16[%c0_46, %c0_47] : memref<8x1xf32, #tpu.memory_space<vmem>>, vector<8x1xf32>
      tpu.vector_store %arg16[%c0_46, %c0_47], %64 {strides = array<i32>} : memref<8x1xf32, #tpu.memory_space<vmem>>, vector<8x1xf32>,
      %cst_48 = arith.constant 0.000000e+00 : f32
      %66 = vector.broadcast %cst_48 : f32 to vector<8x33xf32>
      %c0_49 = arith.constant 0 : index
      %c0_50 = arith.constant 0 : index
      %67 = vector.load %arg17[%c0_49, %c0_50] : memref<8x33xf32, #tpu.memory_space<vmem>>, vector<8x33xf32>
      tpu.vector_store %arg17[%c0_49, %c0_50], %66 {strides = array<i32>} : memref<8x33xf32, #tpu.memory_space<vmem>>, vector<8x33xf32>,
    } else {
    }
    %c0 = arith.constant 0 : index
    %c0_1 = arith.constant 0 : index
    %c0_2 = arith.constant 0 : index
    %3 = vector.load %arg4[%c0, %c0_1, %c0_2] : memref<1x128x32xf32, #tpu.memory_space<vmem>>, vector<1x128x32xf32>
    %4 = vector.shape_cast %3 : vector<1x128x32xf32> to vector<128x32xf32>
    %5 = arith.truncf %4 : vector<128x32xf32> to vector<128x32xbf16>
    %c0_3 = arith.constant 0 : index
    %c0_4 = arith.constant 0 : index
    %6 = vector.load %arg8[%c0_3, %c0_4] : memref<32x32xbf16, #tpu.memory_space<vmem>>, vector<32x32xbf16>
    %cst = arith.constant dense<0.000000e+00> : vector<128x32xf32>
    %7 = tpu.matmul %5, %6, %cst {dimension_numbers = #tpu.dot_dimension_numbers<[1], [0], [0], [1], [0, 0, 1, 1], [], []>} : vector<128x32xbf16>, vector<32x32xbf16>, vector<128x32xf32> -> vector<128x32xf32>
    %c0_5 = arith.constant 0 : index
    %c0_6 = arith.constant 0 : index
    %8 = vector.load %arg9[%c0_5, %c0_6] : memref<1x32xf32, #tpu.memory_space<vmem>>, vector<1x32xf32>
    %9 = vector.broadcast %8 : vector<1x32xf32> to vector<128x32xf32>
    %10 = arith.addf %7, %9 : vector<128x32xf32>
    %11 = arith.truncf %10 : vector<128x32xf32> to vector<128x32xbf16>
    %c0_7 = arith.constant 0 : index
    %c0_8 = arith.constant 0 : index
    %c0_9 = arith.constant 0 : index
    %12 = vector.load %arg4[%c0_7, %c0_8, %c0_9] : memref<1x128x32xf32, #tpu.memory_space<vmem>>, vector<1x128x32xf32>
    %13 = vector.shape_cast %12 : vector<1x128x32xf32> to vector<128x32xf32>
    %14 = arith.truncf %13 : vector<128x32xf32> to vector<128x32xbf16>
    %c0_10 = arith.constant 0 : index
    %c0_11 = arith.constant 0 : index
    %15 = vector.load %arg10[%c0_10, %c0_11] : memref<32x33xbf16, #tpu.memory_space<vmem>>, vector<32x33xbf16>
    %cst_12 = arith.constant dense<0.000000e+00> : vector<128x33xf32>
    %16 = tpu.matmul %14, %15, %cst_12 {dimension_numbers = #tpu.dot_dimension_numbers<[1], [0], [0], [1], [0, 0, 1, 1], [], []>} : vector<128x32xbf16>, vector<32x33xbf16>, vector<128x33xf32> -> vector<128x33xf32>
    %c0_13 = arith.constant 0 : index
    %c0_14 = arith.constant 0 : index
    %17 = vector.load %arg11[%c0_13, %c0_14] : memref<1x33xf32, #tpu.memory_space<vmem>>, vector<1x33xf32>
    %18 = vector.broadcast %17 : vector<1x33xf32> to vector<128x33xf32>
    %19 = arith.addf %16, %18 : vector<128x33xf32>
    %20 = arith.truncf %19 : vector<128x33xf32> to vector<128x33xbf16>
    %c0_15 = arith.constant 0 : index
    %c0_16 = arith.constant 0 : index
    %21 = vector.load %arg15[%c0_15, %c0_16] : memref<8x32xbf16, #tpu.memory_space<vmem>>, vector<8x32xbf16>
    %c0_17 = arith.constant 0 : index
    %c0_18 = arith.constant 0 : index
    %c0_19 = arith.constant 0 : index
    %22 = vector.load %arg5[%c0_17, %c0_18, %c0_19] : memref<1x1x128xf32, #tpu.memory_space<vmem>>, vector<1x1x128xf32>
    %23 = vector.shape_cast %22 : vector<1x1x128xf32> to vector<1x128xf32>
    %cst_20 = arith.constant dense<0.000000e+00> : vector<8x128xf32>
    %24 = tpu.matmul %21, %11, %cst_20 {dimension_numbers = #tpu.dot_dimension_numbers<[1], [1], [0], [0], [0, 0, 1, 0], [], []>} : vector<8x32xbf16>, vector<128x32xbf16>, vector<8x128xf32> -> vector<8x128xf32>
    %cst_21 = arith.constant 1.000000e+00 : f32
    %25 = vector.broadcast %cst_21 : f32 to vector<1x128xf32>
    %26 = arith.subf %25, %23 : vector<1x128xf32>
    %cst_22 = arith.constant -1.000000e+30 : f32
    %27 = vector.broadcast %cst_22 : f32 to vector<1x128xf32>
    %28 = arith.mulf %26, %27 : vector<1x128xf32>
    %29 = vector.broadcast %28 : vector<1x128xf32> to vector<8x128xf32>
    %30 = arith.addf %24, %29 : vector<8x128xf32>
    %c0_23 = arith.constant 0 : index
    %c0_24 = arith.constant 0 : index
    %31 = vector.load %arg16[%c0_23, %c0_24] : memref<8x1xf32, #tpu.memory_space<vmem>>, vector<8x1xf32>
    %cst_25 = arith.constant dense<0xFF800000> : vector<8xf32>
    %32 = vector.multi_reduction <maximumf>, %30, %cst_25 [1] : vector<8x128xf32> to vector<8xf32>
    %33 = vector.shape_cast %32 : vector<8xf32> to vector<8x1xf32>
    %34 = arith.maximumf %31, %33 : vector<8x1xf32>
    %35 = arith.subf %31, %34 : vector<8x1xf32>
    %36 = math.exp %35 : vector<8x1xf32>
    %37 = vector.broadcast %34 : vector<8x1xf32> to vector<8x128xf32>
    %38 = arith.subf %30, %37 : vector<8x128xf32>
    %39 = arith.truncf %38 : vector<8x128xf32> to vector<8x128xbf16>
    %40 = math.exp %39 : vector<8x128xbf16>
    %41 = arith.truncf %23 : vector<1x128xf32> to vector<1x128xbf16>
    %42 = vector.broadcast %41 : vector<1x128xbf16> to vector<8x128xbf16>
    %43 = arith.mulf %40, %42 : vector<8x128xbf16>
    %cst_26 = arith.constant dense<0.000000e+00> : vector<8x33xf32>
    %44 = tpu.matmul %43, %20, %cst_26 {dimension_numbers = #tpu.dot_dimension_numbers<[1], [0], [0], [1], [0, 0, 1, 1], [], []>} : vector<8x128xbf16>, vector<128x33xbf16>, vector<8x33xf32> -> vector<8x33xf32>
    %c0_27 = arith.constant 0 : index
    %c0_28 = arith.constant 0 : index
    %45 = vector.load %arg16[%c0_27, %c0_28] : memref<8x1xf32, #tpu.memory_space<vmem>>, vector<8x1xf32>
    tpu.vector_store %arg16[%c0_27, %c0_28], %34 {strides = array<i32>} : memref<8x1xf32, #tpu.memory_space<vmem>>, vector<8x1xf32>,
    %c0_29 = arith.constant 0 : index
    %c0_30 = arith.constant 0 : index
    %46 = vector.load %arg17[%c0_29, %c0_30] : memref<8x33xf32, #tpu.memory_space<vmem>>, vector<8x33xf32>
    %47 = vector.broadcast %36 : vector<8x1xf32> to vector<8x33xf32>
    %48 = arith.mulf %47, %46 : vector<8x33xf32>
    %49 = arith.addf %48, %44 : vector<8x33xf32>
    %c0_31 = arith.constant 0 : index
    %c0_32 = arith.constant 0 : index
    %50 = vector.load %arg17[%c0_31, %c0_32] : memref<8x33xf32, #tpu.memory_space<vmem>>, vector<8x33xf32>
    tpu.vector_store %arg17[%c0_31, %c0_32], %49 {strides = array<i32>} : memref<8x33xf32, #tpu.memory_space<vmem>>, vector<8x33xf32>,
    %c0_i32_33 = arith.constant 0 : i32
    %51 = arith.cmpi eq, %arg2, %c0_i32_33 : i32
    %52 = arith.extui %51 : i1 to i32
    %c0_i32_34 = arith.constant 0 : i32
    %53 = arith.cmpi ne, %52, %c0_i32_34 : i32
    scf.if %53 {
      %c0_35 = arith.constant 0 : index
      %c0_36 = arith.constant 0 : index
      %54 = vector.load %arg17[%c0_35, %c0_36] : memref<8x33xf32, #tpu.memory_space<vmem>>, vector<8x33xf32>
      %55 = vector.extract_strided_slice %54 {offsets = [0, 0], sizes = [8, 32], strides = [1, 1]} : vector<8x33xf32> to vector<8x32xf32>
      %56 = vector.extract_strided_slice %54 {offsets = [0, 32], sizes = [8, 1], strides = [1, 1]} : vector<8x33xf32> to vector<8x1xf32>
      %cst_37 = arith.constant 0.000000e+00 : f32
      %57 = vector.broadcast %cst_37 : f32 to vector<8x1xf32>
      %58 = arith.cmpf oeq, %56, %57 : vector<8x1xf32>
      %cst_38 = arith.constant 1.000000e+00 : f32
      %59 = vector.broadcast %cst_38 : f32 to vector<8x1xf32>
      %60 = arith.select %58, %59, %56 : vector<8x1xi1>, vector<8x1xf32>
      %61 = tpu.reciprocal %60 {approx = true} : vector<8x1xf32> -> vector<8x1xf32>
      %62 = vector.broadcast %61 : vector<8x1xf32> to vector<8x32xf32>
      %63 = arith.mulf %55, %62 : vector<8x32xf32>
      %cst_39 = arith.constant dense<0.000000e+00> : vector<8xf32>
      %64 = vector.multi_reduction <add>, %63, %cst_39 [1] : vector<8x32xf32> to vector<8xf32>
      %65 = vector.shape_cast %64 : vector<8xf32> to vector<8x1xf32>
      %cst_40 = arith.constant 3.200000e+01 : f32
      %66 = vector.broadcast %cst_40 : f32 to vector<8x1xf32>
      %67 = arith.divf %65, %66 : vector<8x1xf32>
      %68 = vector.broadcast %67 : vector<8x1xf32> to vector<8x32xf32>
      %69 = arith.subf %63, %68 : vector<8x32xf32>
      %70 = arith.mulf %69, %69 : vector<8x32xf32>
      %cst_41 = arith.constant dense<0.000000e+00> : vector<8xf32>
      %71 = vector.multi_reduction <add>, %70, %cst_41 [1] : vector<8x32xf32> to vector<8xf32>
      %72 = vector.shape_cast %71 : vector<8xf32> to vector<8x1xf32>
      %cst_42 = arith.constant 3.200000e+01 : f32
      %73 = vector.broadcast %cst_42 : f32 to vector<8x1xf32>
      %74 = arith.divf %72, %73 : vector<8x1xf32>
      %cst_43 = arith.constant 9.99999974E-6 : f32
      %75 = vector.broadcast %cst_43 : f32 to vector<8x1xf32>
      %76 = arith.addf %74, %75 : vector<8x1xf32>
      %77 = math.rsqrt %76 : vector<8x1xf32>
      %78 = vector.broadcast %77 : vector<8x1xf32> to vector<8x32xf32>
      %79 = arith.mulf %69, %78 : vector<8x32xf32>
      %c0_44 = arith.constant 0 : index
      %c0_45 = arith.constant 0 : index
      %80 = vector.load %arg12[%c0_44, %c0_45] : memref<1x32xf32, #tpu.memory_space<vmem>>, vector<1x32xf32>
      %81 = vector.broadcast %80 : vector<1x32xf32> to vector<8x32xf32>
      %82 = arith.mulf %79, %81 : vector<8x32xf32>
      %c0_46 = arith.constant 0 : index
      %c0_47 = arith.constant 0 : index
      %83 = vector.load %arg13[%c0_46, %c0_47] : memref<1x32xf32, #tpu.memory_space<vmem>>, vector<1x32xf32>
      %84 = vector.broadcast %83 : vector<1x32xf32> to vector<8x32xf32>
      %85 = arith.addf %82, %84 : vector<8x32xf32>
      %c0_48 = arith.constant 0 : index
      %c0_49 = arith.constant 0 : index
      %c0_50 = arith.constant 0 : index
      %86 = vector.load %arg14[%c0_48, %c0_49, %c0_50] : memref<1x8x32xf32, #tpu.memory_space<vmem>>, vector<1x8x32xf32>
      %87 = vector.shape_cast %86 : vector<1x8x32xf32> to vector<8x32xf32>
      %88 = vector.shape_cast %85 : vector<8x32xf32> to vector<1x8x32xf32>
      tpu.vector_store %arg14[%c0_48, %c0_49, %c0_50], %88 {strides = array<i32>} : memref<1x8x32xf32, #tpu.memory_space<vmem>>, vector<1x8x32xf32>,
    } else {
    }
    return
  }
  func.func @transform_0(%arg0: i32, %arg1: i32, %arg2: i32) -> (i32, i32, i32) {
    %c0_i32 = arith.constant 0 : i32
    %c0_i32_0 = arith.constant 0 : i32
    return %arg0, %arg1, %c0_i32 : i32, i32, i32
  }
  func.func @transform_1(%arg0: i32, %arg1: i32, %arg2: i32) -> (i32, i32, i32) {
    %c0_i32 = arith.constant 0 : i32
    %c0_i32_0 = arith.constant 0 : i32
    return %arg0, %arg2, %c0_i32 : i32, i32, i32
  }
  func.func @transform_2(%arg0: i32, %arg1: i32, %arg2: i32) -> (i32, i32, i32) {
    %c0_i32 = arith.constant 0 : i32
    %c0_i32_0 = arith.constant 0 : i32
    return %arg0, %c0_i32, %arg2 : i32, i32, i32
  }
  func.func @transform_3(%arg0: i32, %arg1: i32, %arg2: i32) -> (i32, i32) {
    %c0_i32 = arith.constant 0 : i32
    %c0_i32_0 = arith.constant 0 : i32
    %c0_i32_1 = arith.constant 0 : i32
    return %c0_i32, %c0_i32_0 : i32, i32
  }
  func.func @transform_4(%arg0: i32, %arg1: i32, %arg2: i32) -> (i32, i32) {
    %c0_i32 = arith.constant 0 : i32
    %c0_i32_0 = arith.constant 0 : i32
    %c0_i32_1 = arith.constant 0 : i32
    return %c0_i32, %c0_i32_0 : i32, i32
  }
  func.func @transform_5(%arg0: i32, %arg1: i32, %arg2: i32) -> (i32, i32) {
    %c0_i32 = arith.constant 0 : i32
    %c0_i32_0 = arith.constant 0 : i32
    %c0_i32_1 = arith.constant 0 : i32
    return %c0_i32, %c0_i32_0 : i32, i32
  }
  func.func @transform_6(%arg0: i32, %arg1: i32, %arg2: i32) -> (i32, i32) {
    %c0_i32 = arith.constant 0 : i32
    %c0_i32_0 = arith.constant 0 : i32
    %c0_i32_1 = arith.constant 0 : i32
    return %c0_i32, %c0_i32_0 : i32, i32
  }
  func.func @transform_7(%arg0: i32, %arg1: i32, %arg2: i32) -> (i32, i32) {
    %c0_i32 = arith.constant 0 : i32
    %c0_i32_0 = arith.constant 0 : i32
    %c0_i32_1 = arith.constant 0 : i32
    return %c0_i32, %c0_i32_0 : i32, i32
  }
  func.func @transform_8(%arg0: i32, %arg1: i32, %arg2: i32) -> (i32, i32) {
    %c0_i32 = arith.constant 0 : i32
    %c0_i32_0 = arith.constant 0 : i32
    %c0_i32_1 = arith.constant 0 : i32
    return %c0_i32, %c0_i32_0 : i32, i32
  }
  func.func @transform_9(%arg0: i32, %arg1: i32, %arg2: i32) -> (i32, i32) {
    %c0_i32 = arith.constant 0 : i32
    %c0_i32_0 = arith.constant 0 : i32
    %c0_i32_1 = arith.constant 0 : i32
    return %c0_i32, %c0_i32_0 : i32, i32
  }
  func.func @transform_10(%arg0: i32, %arg1: i32, %arg2: i32) -> (i32, i32) {
    %c0_i32 = arith.constant 0 : i32
    %c0_i32_0 = arith.constant 0 : i32
    %c0_i32_1 = arith.constant 0 : i32
    return %c0_i32, %c0_i32_0 : i32, i32
  }
  func.func @transform_11(%arg0: i32, %arg1: i32, %arg2: i32) -> (i32, i32, i32) {
    %c0_i32 = arith.constant 0 : i32
    %c0_i32_0 = arith.constant 0 : i32
    return %arg0, %arg1, %c0_i32 : i32, i32, i32
  }
}

</mosaic_0001>

<bundles_post_ra>
// kernel: tpu_custom_call.1
= control target key start
LH: loop header
LB: loop body
LE: loop exit
PB: predicated region body
PF: predicated region fallthrough
CT: control target
= control target key end

     0   :  { %s1851_s0 = inlined_call_operand.vmem [shape: f32[2,8,32], index: 0, kind: input, shape index: {}]   ;;  %s1852_s1 = inlined_call_operand.vmem [shape: f32[2,128,32], index: 1, kind: input, shape index: {}]   ;;  %s1853_s2 = inlined_call_operand.vmem [shape: f32[2,1,128], index: 2, kind: input, shape index: {}]   ;;  %s1854_s3 = inlined_call_operand.vmem [shape: bf16[32,32], index: 3, kind: input, shape index: {}]   ;;  %s1855_s4 = inlined_call_operand.vmem [shape: f32[1,32], index: 4, kind: input, shape index: {}]   ;;  %s1856_s5 = inlined_call_operand.vmem [shape: bf16[32,32], index: 5, kind: input, shape index: {}]   ;;  %s1857_s6 = inlined_call_operand.vmem [shape: f32[1,32], index: 6, kind: input, shape index: {}]   ;;  %s1858_s7 = inlined_call_operand.vmem [shape: bf16[32,33], index: 7, kind: input, shape index: {}]   ;;  %s1859_s8 = inlined_call_operand.vmem [shape: f32[1,33], index: 8, kind: input, shape index: {}]   ;;  %s1860_s9 = inlined_call_operand.vmem [shape: f32[1,32], index: 9, kind: input, shape index: {}]   ;;  %s1861_s10 = inlined_call_operand.vmem [shape: f32[1,32], index: 10, kind: input, shape index: {}]   ;;  %s1862_s11 = inlined_call_operand.hbm [shape: f32[2,8,32], index: 11, kind: output, shape index: {}]  }
   0x1   :  { %1863 = sst [smem:[#allocation8_spill]] %s1851_s0 }
   0x2   :  { %1864 = sst [smem:[#allocation9_spill]] %s1852_s1 }
   0x3   :  { %1865 = sst [smem:[#allocation10_spill]] %s1856_s5 }
   0x4   :  { %16 = vsyncpa [#allocation6], 0 }
   0x5   :  { %18 = vsyncpa [#allocation6 + $0x1], 0  ;;  %s1575_s17 = smov 0   ;;  %s1577_s18 = smov 0  }
   0x6   :  { %s1579_s19 = smov 0   ;;  %s1581_s20 = smov 0  }
   0x7   :  { %s1583_s21 = smov 0   ;;  %s1585_s22 = smov 0  }
   0x8 LB: > { %s1179_s23 = sadd.s32 4294967295, %s1507_s22   ;;  %s1180_s24 = sadd.s32 4294967294, %s1507_s22   ;;  %s1507_s22 = sphi %s1585_s22, %s24_s22   ;;  %s1503_s21 = sphi %s1583_s21, %s1875_s21   ;;  %s1499_s20 = sphi %s1581_s20, %s1874_s20   ;;  %s1495_s19 = sphi %s1579_s19, %s1873_s19   ;;  %s1491_s18 = sphi %s1577_s18, %s1872_s18   ;;  %s1487_s17 = sphi %s1575_s17, %s1871_s17  }
   0x9   : > { %s43_s25 = sadd.s32 1, %s1503_s21  ;;  %s304_s26 = sadd.s32 1, %s1495_s19 }
   0xa   : > { %p45_p0 = scmp.ge.s32.totalorder %s43_s25, 2  ;;  %p314_p1 = scmp.ne.s32.totalorder %s1495_s19, %s1491_s18 }
   0xb   : > { %p315_p2 = scmp.eq.s32.totalorder %s1179_s23, 1  ;;  %p320_p3 = scmp.ne.s32.totalorder %s1491_s18, %s1487_s17 }
   0xc   : > { %s1877_s25 = smov (%p45_p0, %s43_s25), 0  ;;  %p321_p5 = scmp.eq.s32.totalorder %s1180_s24, 1 }
   0xd   : > { %p1615_p4 = por %p315_p2, %p314_p1  ;;  %s299_s28 = ssub.s32 %s1503_s21, %s1877_s25 }
   0xe   : > { %p1183_p6 = scmp.ge.s32.totalorder %s1507_s22, 1  ;;  %p302_p7 = scmp.eq.s32.totalorder %s299_s28, 0 }
   0xf   : > { %p1622_p8 = por %p321_p5, %p320_p3  ;;  %p395_p9 = scmp.lt.s32.totalorder %s1507_s22, 3 }
  0x10   : > { %s1628_s30 = scalar_select %p302_p7, %s1495_s19, %s304_s26  }
  0x11   : > { %p396_p10 = pnand %p1183_p6, %p395_p9 }
  0x12   : > { %s1868_s5 = sld [smem:[#allocation10_spill]] (!%p396_p10)  ;;  %p452_p11 = scmp.lt.s32.totalorder (!%p396_p10), %s1499_s20, 1  ;;  %v1509_v2 = vmov (!%p396_p10), 0.0   ;;  %v1417_v3 = vld [vmem:[%s1854_s3] sm:$0xff] (!%p396_p10)   ;;  %v1418_v4 = vld [vmem:[%s1854_s3 + $0x8] sm:$0xff] (!%p396_p10)   ;;  %vm1510_vm0 = vmmov (!%p396_p10), 0  }
  0x13   : > { %399 = sbr.rel (%p396_p10) target bundleno = 1515 (0x5eb), region = 64  ;;  %1263 = vmatprep.subr.bf16.mxu0 (!%p396_p10), %v1509_v2  ;;  %1267 = vmatprep.mubr.msk.bf16.mxu0 (!%p396_p10), %vm1510_vm0, %v1509_v2  ;;  %s1869_s1 = sld [smem:[#allocation9_spill]] (!%p396_p10)  ;;  %vm505_vm1 = vcmask (!%p396_p10), 261120   ;;  %v1192_v32 = vld [vmem:[%s1857_s6] ss:$0 sm:$0xff] (!%p396_p10)  ;;  %vm550_vm2 = vcmask (!%p396_p10), 257024  }
  0x14   : > { %1264 = vmatpush3.bf16.msra.mxu0 (!%p396_p10), %v1417_v3  ;;  %s1870_s0 = sld [smem:[#allocation8_spill]] (!%p396_p10)  ;;  %v1188_v35 = vld [vmem:[%s1855_s4] ss:$0 sm:$0xff] (!%p396_p10)  ;;  %vm552_vm3 = vcmask (!%p396_p10), 7168   ;;  %vm554_vm4 = vcmask (!%p396_p10), 269312   ;;  %s449_s14 = sand.u32 (!%p396_p10), 1, %s1491_s18  }
  0x15   : > { %1265 = vmatprep.subr.bf16.mxu0 (!%p396_p10), %v1509_v2  ;;  %555 = vst.msk [vmem:[#allocation4] sm:$0xff] (!%p396_p10), %vm554_vm4, %v1509_v2  ;;  %s1218_s28 = sshll.u32 (!%p396_p10), %s1499_s20, 7  ;;  %s1061_s15 = scalar_lea.sflag (!%p396_p10), [#allocation6], %s449_s14 }
  0x18   : > { %v1415_v0 = vld [vmem:[%s1868_s5] sm:$0xff] (!%p396_p10)   ;;  %v1416_v1 = vld [vmem:[%s1868_s5 + $0x8] sm:$0xff] (!%p396_p10)   ;;  %1266 = vmatpush3.bf16.msra.mxu0 (!%p396_p10), %v1418_v4 }
  0x19   : > { %1271 = vmatprep.subr.bf16.mxu1 (!%p396_p10), %v1415_v0 }
  0x1a   : > { %s1638_s16 = scalar_select %p452_p11, %s1499_s20, 1  ;;  %1272 = vmatpush3.bf16.msra.mxu1 %v1415_v0 }
  0x1b   : > { %1273 = vmatprep.subr.bf16.mxu1 %v1416_v1  ;;  %s1514_s20 = smov [#allocation5]  }
  0x1c   : > { %s1221_s26 = sshll.u32 %s1638_s16, 7  ;;  %s1185_s13 = sshll.u32 %s1638_s16, 3 }
  0x1d   : > { %s1654_s5 = scalar_lea.vmem %s1869_s1, %s1221_s26  ;;  %s458_s26 = scalar_lea.vmem %s1870_s0, %s1185_s13 }
  0x1e   : > { %v556_v5 = vld [vmem:[%s1654_s5] sm:$0xff]  ;;  %v557_v6 = vld [vmem:[%s1654_s5 + $0x8] sm:$0xff]  ;;  %v558_v7 = vld [vmem:[%s1654_s5 + $0x10] sm:$0xff]  ;;  %1274 = vmatpush3.bf16.msra.mxu1 %v1416_v1  ;;  %s474_s12 = scalar_lea.vmem %s1853_s2, %s1638_s16  ;;  %s1803_s1 = scalar_lea.hbm %s1862_s11, %s1218_s28 }
  0x1f   : > { %v572_v8 = vpack.c.bf16 %v557_v6, %v556_v5  ;;  %v559_v9 = vld [vmem:[%s1654_s5 + $0x18] sm:$0xff]  ;;  %v560_v10 = vld [vmem:[%s1654_s5 + $0x20] sm:$0xff]  ;;  %v561_v11 = vld [vmem:[%s1654_s5 + $0x28] sm:$0xff]  ;;  %1311 = vmatprep.subr.bf16.mxu1 %v1509_v2 }
  0x20   : > { %v1663_v12 = vpack.c.bf16 %v559_v9, %v558_v7  ;;  %v1665_v13 = vpack.c.bf16 %v561_v11, %v560_v10  ;;  %v562_v14 = vld [vmem:[%s1654_s5 + $0x30] sm:$0xff]  ;;  %v563_v15 = vld [vmem:[%s1654_s5 + $0x38] sm:$0xff]  ;;  %v480_v16 = vld [vmem:[%s458_s26] sm:$0xff] }
  0x21   : > { %1275 = vmatprep.mubr.msk.bf16.mxu1 %vm505_vm1, %v572_v8  ;;  %v564_v17 = vld [vmem:[%s1654_s5 + $0x40] sm:$0xff]  ;;  %v565_v18 = vld [vmem:[%s1654_s5 + $0x48] sm:$0xff]  ;;  %v481_v19 = vpack.c.bf16 %v480_v16, %v480_v16  ;;  %v1680_v20 = vpack.c.bf16 %v563_v15, %v562_v14  ;;  %v566_v22 = vld [vmem:[%s1654_s5 + $0x50] sm:$0xff] }
  0x22   : > { %1276 = vmatmul.mubr.msk.bf16.vlgmr.msra.gmra.mrb[0].mxu1 %vm505_vm1, %v1663_v12  ;;  %v1683_v21 = vpack.c.bf16 %v565_v18, %v564_v17  ;;  %v567_v23 = vld [vmem:[%s1654_s5 + $0x58] sm:$0xff]  ;;  %v568_v24 = vld [vmem:[%s1654_s5 + $0x60] sm:$0xff]  ;;  %v569_v25 = vld [vmem:[%s1654_s5 + $0x68] sm:$0xff] }
  0x23   : > { %1279 = vmatprep.mubr.msk.bf16.mxu1 %vm505_vm1, %v1665_v13  ;;  %1268 = vmatmul.mubr.msk.bf16.vlgmr.msra.gmra.mrb[0].mxu0 %vm505_vm1, %v481_v19  ;;  %v1694_v26 = vpack.c.bf16 %v567_v23, %v566_v22  ;;  %v1696_v27 = vpack.c.bf16 %v569_v25, %v568_v24  ;;  %v570_v28 = vld [vmem:[%s1654_s5 + $0x70] sm:$0xff]  ;;  %v571_v29 = vld [vmem:[%s1654_s5 + $0x78] sm:$0xff]  ;;  %s1184_s5 = sshll.u32 %s449_s14, 3 }
  0x24   : > { %1295 = vmatprep.mubr.msk.bf16.mxu0 %vm505_vm1, %v572_v8  ;;  %v1704_v30 = vpack.c.bf16 %v571_v29, %v570_v28 }
  0x2a   : > { %1280 = vmatmul.mubr.msk.bf16.gmra.mrb[4].mxu1 %vm505_vm1, %v1680_v20 }
  0x2b   : > { %1283 = vmatprep.mubr.msk.bf16.mxu1 %vm505_vm1, %v1683_v21 }
  0x32   : > { %1284 = vmatmul.mubr.msk.bf16.gmra.mrb[8].mxu1 %vm505_vm1, %v1694_v26 }
  0x33   : > { %1287 = vmatprep.mubr.msk.bf16.mxu1 %vm505_vm1, %v1696_v27 }
  0x3a   : > { %1288 = vmatmul.mubr.msk.bf16.gmra.mrb[12].mxu1 %vm505_vm1, %v1704_v30 }
  0x3b   : > { %1327 = vmatprep.mubr.msk.bf16.mxu1 %vm1510_vm0, %v1509_v2 }
  0xf5   : > { %v1277_v31 = vpop.f32.mrb[0].mxu1 }
  0xf6   : > { %v662_v33 = vpop.f32.mrb[1].mxu1  ;;  %v671_v36 = vadd.f32 %v1277_v31, %v1192_v32  ;;  %v543_v41 = vpop.f32.mrb[0].mxu0 }
  0xf7   : > { %v1278_v34 = vpop.f32.mrb[2].mxu1  ;;  %v663_v39 = vadd.f32 %v1192_v32, %v662_v33  ;;  %v544_v43 = vadd.f32 %v1188_v35, %v543_v41  ;;  %v1269_v44 = vpop.f32.mrb[1].mxu0  ;;  %v1420_v33 = vld [vmem:[%s1858_s7 + $0x8] sm:$0xff]   ;;  %v1203_v41 = vld [vmem:[%s1859_s8] ss:$0 sm:$0xff] }
  0xf8   : > { %v674_v37 = vadd.f32 %v1278_v34, %v1192_v32  ;;  %v665_v38 = vpop.f32.mrb[3].mxu1  ;;  %v546_v46 = vpop.f32.mrb[2].mxu0  ;;  %v1511_v34 = vmov -1e+30  }
  0xf9   : > { %v666_v40 = vadd.f32 %v1192_v32, %v665_v38  ;;  %v549_v47 = vpack.c.bf16 %v544_v43, %v544_v43  ;;  %v1270_v48 = vpop.f32.mrb[3].mxu0  ;;  %553 = vst.msk [vmem:[#allocation3] sm:$0xff] %vm552_vm3, %v1511_v34 }
  0xfa   : > { %v726_v42 = vpack.c.bf16 %v674_v37, %v671_v36 }
  0xfb   : > { %v725_v45 = vpack.c.bf16 %v666_v40, %v663_v39  ;;  %551 = vst.msk [vmem:[#allocation2] sm:$0xf] %vm550_vm2, %v549_v47  ;;  %v1512_v40 = vmov 0  }
  0xfc   : > { %v878_v60 = vsel %vm505_vm1, %v726_v42, 0  ;;  %1411 = vset.pattern.permute.xlu0 %v1512_v40  ;;  %1412 = vset.pattern.permute.xlu1 %v1512_v40 }
  0xfd   : > { %v875_v49 = vsel %vm505_vm1, %v725_v45, 0  ;;  %v1281_v50 = vpop.f32.mrb[4].mxu1 }
  0xfe   : > { %1312 = vmatpush3.bf16.xpose.msra.mxu1 %v875_v49  ;;  %v687_v51 = vadd.f32 %v1281_v50, %v1192_v32  ;;  %v678_v52 = vpop.f32.mrb[5].mxu1 }
  0xff   : > { %v679_v53 = vadd.f32 %v1192_v32, %v678_v52  ;;  %v1282_v54 = vpop.f32.mrb[6].mxu1  ;;  %1313 = vmatprep.subr.bf16.mxu1 %v1509_v2 }
 0x100   : > { %v690_v55 = vadd.f32 %v1282_v54, %v1192_v32  ;;  %v681_v56 = vpop.f32.mrb[7].mxu1 }
 0x101   : > { %v682_v57 = vadd.f32 %v1192_v32, %v681_v56 }
 0x102   : > { %v728_v58 = vpack.c.bf16 %v690_v55, %v687_v51  ;;  %v861_v31 = vld [vmem:[#allocation2] sm:$0xf] }
 0x103   : > { %v727_v59 = vpack.c.bf16 %v682_v57, %v679_v53 }
 0x104   : > { %v884_v23 = vsel %vm505_vm1, %v728_v58, 0 }
 0x105   : > { %v1285_v61 = vpop.f32.mrb[8].mxu1  ;;  %v881_v8 = vsel %vm505_vm1, %v727_v59, 0 }
 0x106   : > { %1314 = vmatpush3.bf16.xpose.msra.mxu1 %v878_v60  ;;  %v703_v62 = vadd.f32 %v1285_v61, %v1192_v32  ;;  %v694_v63 = vpop.f32.mrb[9].mxu1 }
 0x107   : > { %1315 = vmatprep.subr.bf16.mxu1 %v1509_v2  ;;  %v695_v0 = vadd.f32 %v1192_v32, %v694_v63  ;;  %v1286_v1 = vpop.f32.mrb[10].mxu1 }
 0x108   : > { %v706_v3 = vadd.f32 %v1286_v1, %v1192_v32  ;;  %v697_v4 = vpop.f32.mrb[11].mxu1 }
 0x109   : > { %v698_v5 = vadd.f32 %v1192_v32, %v697_v4 }
 0x10a   : > { %v730_v6 = vpack.c.bf16 %v706_v3, %v703_v62 }
 0x10b   : > { %v729_v7 = vpack.c.bf16 %v698_v5, %v695_v0 }
 0x10c   : > { %v890_v25 = vsel %vm505_vm1, %v730_v6, 0 }
 0x10d   : > { %v1289_v9 = vpop.f32.mrb[12].mxu1  ;;  %v887_v24 = vsel %vm505_vm1, %v729_v7, 0 }
 0x10e   : > { %1316 = vmatpush3.bf16.xpose.msra.mxu1 %v881_v8  ;;  %v719_v10 = vadd.f32 %v1289_v9, %v1192_v32  ;;  %v710_v11 = vpop.f32.mrb[13].mxu1 }
 0x10f   : > { %1317 = vmatprep.subr.bf16.mxu1 %v1509_v2  ;;  %v711_v14 = vadd.f32 %v1192_v32, %v710_v11  ;;  %v1290_v15 = vpop.f32.mrb[14].mxu1  ;;  %v938_v11 = vld [vmem:[#allocation3] sm:$0xff] }
 0x110   : > { %v722_v16 = vadd.f32 %v1290_v15, %v1192_v32  ;;  %v713_v17 = vpop.f32.mrb[15].mxu1 }
 0x111   : > { %v714_v18 = vadd.f32 %v1192_v32, %v713_v17  ;;  %v1419_v32 = vld [vmem:[%s1858_s7] sm:$0xff]  }
 0x112   : > { %v732_v19 = vpack.c.bf16 %v722_v16, %v719_v10  ;;  %1291 = vmatprep.subr.bf16.mxu0 %v1419_v32 }
 0x113   : > { %v731_v22 = vpack.c.bf16 %v714_v18, %v711_v14  ;;  %1292 = vmatpush3.bf16.msra.mxu0 %v1419_v32 }
 0x114   : > { %v896_v29 = vsel %vm505_vm1, %v732_v19, 0  ;;  %1293 = vmatprep.subr.bf16.mxu0 %v1420_v33 }
 0x115   : > { %v893_v28 = vsel %vm505_vm1, %v731_v22, 0 }
 0x116   : > { %1318 = vmatpush3.bf16.xpose.msra.mxu1 %v884_v23 }
 0x117   : > { %1319 = vmatprep.subr.bf16.mxu1 %v1509_v2  ;;  %1294 = vmatpush3.bf16.msra.mxu0 %v1420_v33 }
 0x118   : > { %1331 = vmatprep.subr.bf16.mxu0 %v1509_v2 }
 0x11a   : > { %1296 = vmatmul.mubr.msk.bf16.vlgmr.msra.gmra.mrb[4].mxu0 %vm505_vm1, %v1663_v12  ;;  %v866_v12 = vlaneseq }
 0x11b   : > { %1299 = vmatprep.mubr.msk.bf16.mxu0 %vm505_vm1, %v1665_v13  ;;  %v1760_v13 = vld [vmem:[%s474_s12] sm:$0x1]  ;;  %s451_s12 = scalar_lea.vmem [#allocation5], %s1184_s5  ;;  %s1433_s5 = sshll.u32 %s1514_s20, 4  ;;  %s1434_s5 = int_to_ptr.vmem [resolvable:$false] %s1433_s5 }
 0x11c   : > { %s1075_s16 = sshll.u32 %s451_s12, 4  ;;  %s1435_s24 = scalar_lea.vmem %s1434_s5, 256  ;;  %s1805_s16 = int_to_ptr.vmem [resolvable:$true] %s1075_s16 }
 0x11d   : > { %s1429_s23 = scalar_lea.vmem %s1805_s16, 128  ;;  %p1436_p1 = scmp.lt.s32.totalorder %s1805_s16, %s1434_s5 }
 0x11e   : > { %1320 = vmatpush3.bf16.xpose.msra.mxu1 %v887_v24  ;;  %p1430_p12 = scmp.ne.s32.totalorder %s1805_s16, %s1429_s23  ;;  %p1437_p2 = scmp.lt.s32.totalorder %s1435_s24, %s1429_s23 }
 0x11f   : > { %1321 = vmatprep.subr.bf16.mxu1 %v1509_v2 }
 0x120   : > { %p1431_p13 = pnand %p1430_p12, %p1615_p4  ;;  %p1438_p3 = por %p1437_p2, %p1436_p1 }
 0x122   : > { %1300 = vmatmul.mubr.msk.bf16.gmra.mrb[8].mxu0 %vm505_vm1, %v1680_v20  ;;  %v863_v20 = vsub.f32 1.0, %v1760_v13  ;;  %p1432_p0 = pneg %p1431_p13 }
 0x123   : > { %1303 = vmatprep.mubr.msk.bf16.mxu0 %vm505_vm1, %v1683_v21  ;;  %v1763_v21 = vshrl.u32 %v866_v12, 7 }
 0x124   : > { %p1439_p5 = pnand %p1438_p3, %p1432_p0 }
 0x126   : > { %1322 = vmatpush3.bf16.xpose.msra.mxu1 %v890_v25 }
 0x127   : > { %1323 = vmatprep.subr.bf16.mxu1 %v1509_v2 }
 0x12a   : > { %1304 = vmatmul.mubr.msk.bf16.gmra.mrb[12].mxu0 %vm505_vm1, %v1694_v26  ;;  %v864_v26 = vmul.f32 -1e+30, %v863_v20  ;;  %v955_v20 = vpack.c.bf16 %v1760_v13, %v1760_v13 }
 0x12b   : > { %1307 = vmatprep.mubr.msk.bf16.mxu0 %vm505_vm1, %v1696_v27  ;;  %v868_v27 = vsub.s32 0, %v1763_v21 }
 0x12e   : > { %1324 = vmatpush3.bf16.xpose.msra.mxu1 %v893_v28 }
 0x12f   : > { %1325 = vmatprep.subr.bf16.mxu1 %v1509_v2 }
 0x132   : > { %1308 = vmatmul.mubr.msk.bf16.gmra.mrb[16].mxu0 %vm505_vm1, %v1704_v30  ;;  %v869_v30 = vrot.slane %v864_v26, %v868_v27  ;;  %v957_v26 = vpack.i.b16 %v955_v20, %v955_v20 }
 0x133   : > { %1347 = vmatprep.mubr.msk.bf16.mxu0 %vm1510_vm0, %v1509_v2 }
 0x136   : > { %1326 = vmatpush3.bf16.xpose.msra.mxu1 %v896_v29 }
 0x13d   : > { %1328 = vmatmul.mubr.msk.bf16.vlgmr.msra.gmra.mrb[16].mxu1 %vm505_vm1, %v861_v31 }
 0x1ed   : > { %v1297_v42 = vpop.f32.mrb[4].mxu0 }
 0x1ee   : > { %v799_v43 = vadd.f32 %v1297_v42, %v1203_v41  ;;  %v790_v44 = vpop.f32.mrb[5].mxu0 }
 0x1ef   : > { %v791_v45 = vadd.f32 %v1203_v41, %v790_v44  ;;  %v1298_v46 = vpop.f32.mrb[6].mxu0 }
 0x1f0   : > { %v802_v47 = vadd.f32 %v1298_v46, %v1203_v41  ;;  %v793_v48 = vpop.f32.mrb[7].mxu0 }
 0x1f1   : > { %v794_v49 = vadd.f32 %v1203_v41, %v793_v48 }
 0x1f2   : > { %v854_v50 = vpack.c.bf16 %v802_v47, %v799_v43 }
 0x1f3   : > { %v853_v51 = vpack.c.bf16 %v794_v49, %v791_v45 }
 0x1f5   : > { %v1301_v52 = vpop.f32.mrb[8].mxu0  ;;  %1332 = vmatpush3.bf16.msra.mxu0 %v853_v51 }
 0x1f6   : > { %v815_v53 = vadd.f32 %v1301_v52, %v1203_v41  ;;  %v806_v54 = vpop.f32.mrb[9].mxu0  ;;  %1333 = vmatprep.subr.bf16.mxu0 %v1509_v2 }
 0x1f7   : > { %v807_v55 = vadd.f32 %v1203_v41, %v806_v54  ;;  %v1302_v56 = vpop.f32.mrb[10].mxu0 }
 0x1f8   : > { %v818_v57 = vadd.f32 %v1302_v56, %v1203_v41  ;;  %v809_v58 = vpop.f32.mrb[11].mxu0 }
 0x1f9   : > { %v810_v59 = vadd.f32 %v1203_v41, %v809_v58  ;;  %1334 = vmatpush3.bf16.msra.mxu0 %v854_v50 }
 0x1fa   : > { %v856_v60 = vpack.c.bf16 %v818_v57, %v815_v53  ;;  %1335 = vmatprep.subr.bf16.mxu0 %v1509_v2  ;;  %v1215_v57 = vld [vmem:[%s1860_s9] ss:$0 sm:$0xff] }
 0x1fb   : > { %v855_v61 = vpack.c.bf16 %v810_v59, %v807_v55  ;;  %v1216_v59 = vld [vmem:[%s1861_s10] ss:$0 sm:$0xff] }
 0x1fd   : > { %v1305_v62 = vpop.f32.mrb[12].mxu0  ;;  %1336 = vmatpush3.bf16.msra.mxu0 %v855_v61 }
 0x1fe   : > { %v831_v63 = vadd.f32 %v1305_v62, %v1203_v41  ;;  %v822_v0 = vpop.f32.mrb[13].mxu0  ;;  %1337 = vmatprep.subr.bf16.mxu0 %v1509_v2 }
 0x1ff   : > { %v823_v1 = vadd.f32 %v1203_v41, %v822_v0  ;;  %v1306_v3 = vpop.f32.mrb[14].mxu0 }
 0x200   : > { %v834_v4 = vadd.f32 %v1306_v3, %v1203_v41  ;;  %v825_v5 = vpop.f32.mrb[15].mxu0 }
 0x201   : > { %v826_v6 = vadd.f32 %v1203_v41, %v825_v5  ;;  %1338 = vmatpush3.bf16.msra.mxu0 %v856_v60 }
 0x202   : > { %v858_v7 = vpack.c.bf16 %v834_v4, %v831_v63  ;;  %1339 = vmatprep.subr.bf16.mxu0 %v1509_v2 }
 0x203   : > { %v857_v8 = vpack.c.bf16 %v826_v6, %v823_v1 }
 0x205   : > { %v1309_v9 = vpop.f32.mrb[16].mxu0  ;;  %1340 = vmatpush3.bf16.msra.mxu0 %v857_v8 }
 0x206   : > { %v838_v10 = vpop.f32.mrb[17].mxu0  ;;  %1341 = vmatprep.subr.bf16.mxu0 %v1509_v2  ;;  %v847_v24 = vadd.f32 %v1309_v9, %v1203_v41 }
 0x207   : > { %v839_v17 = vadd.f32 %v1203_v41, %v838_v10  ;;  %v1310_v18 = vpop.f32.mrb[18].mxu0 }
 0x208   : > { %v841_v19 = vpop.f32.mrb[19].mxu0  ;;  %v850_v28 = vadd.f32 %v1310_v18, %v1203_v41 }
 0x209   : > { %1342 = vmatpush3.bf16.msra.mxu0 %v858_v7  ;;  %v842_v23 = vadd.f32 %v1203_v41, %v841_v19 }
 0x20a   : > { %1343 = vmatprep.subr.bf16.mxu0 %v1509_v2  ;;  %v860_v29 = vpack.c.bf16 %v850_v28, %v847_v24 }
 0x20b   : > { %v859_v25 = vpack.c.bf16 %v842_v23, %v839_v17 }
 0x20d   : > { %1344 = vmatpush3.bf16.msra.mxu0 %v859_v25 }
 0x20e   : > { %1345 = vmatprep.subr.bf16.mxu0 %v1509_v2  ;;  %v1513_v2 = vmov 32  }
 0x210   : > { %v932_v35 = vpop.f32.mrb[16].mxu1 }
 0x211   : > { %v1768_v36 = vadd.f32 %v932_v35, %v869_v30  ;;  %v1329_v37 = vpop.f32.mrb[17].mxu1  ;;  %1346 = vmatpush3.bf16.msra.mxu0 %v860_v29  ;;  %v962_v30 = vrot.slane %v957_v26, %v868_v27 }
 0x212   : > { %v935_v38 = vpop.f32.mrb[18].mxu1 }
 0x213   : > { %939 = vmax.xlane.f32.xlu0 %v1768_v36  ;;  %v1330_v39 = vpop.f32.mrb[19].mxu1  ;;  %v1006_v38 = vld [vmem:[#allocation4] sm:$0xff] }
 0x2a0   : > { %v940_v14 = vpop.xlane.xlu0 %939 }
 0x2a1   : > { %v941_v15 = vmax.f32 %v938_v11, %v940_v14 }
 0x2a3   : > { %v942_v16 = vsub.f32 %v938_v11, %v941_v15  ;;  %1005 = vst.msk [vmem:[#allocation3] sm:$0xff] %vm552_vm3, %v941_v15  ;;  %947 = vperm.xlu0 %1411, %v941_v15  }
 0x2a5   : > { %v943_v22 = vmul.f32 1.442695, %v942_v16 }
 0x2a7   : > { %1421 = vpow2.f32 %v943_v22  ;;  %1414 = vset.pattern.permute.xlu0 %v1513_v2 }
 0x2b1   : > { %v1422_v31 = vpop.eup %1421 }
 0x2b2   : > { %1009 = vperm.xlu1 %1412, %v1422_v31  }
 0x2b6   : > { %1413 = vset.pattern.permute.xlu1 %v1513_v2 }
 0x322   : > { %v948_v32 = vpop.permute.xlu0 %947 }
 0x323   : > { %v950_v33 = vsub.f32 %v1768_v36, %v948_v32 }
 0x325   : > { %v951_v34 = vpack.c.bf16 %v950_v33, %v950_v33 }
 0x327   : > { %v953_v12 = vmul.bf16 1069105081, %v951_v34 }
 0x329   : > { %1423 = vpow.bf16 %v953_v12 }
 0x331   : > { %v1010_v39 = vpop.permute.xlu1 %1009 }
 0x332   : > { %v1012_v40 = vmul.f32 %v1010_v39, %v1006_v38 }
 0x334   : > { %v1424_v35 = vpop.eup %1423 }
 0x335   : > { %v963_v37 = vmul.bf16 %v1424_v35, %v962_v30 }
 0x337   : > { %1348 = vmatmul.mubr.bf16.vlgmr.msra.gmra.mrb[20].mxu0 %v963_v37 }
 0x40a   : > { %v998_v36 = vpop.f32.mrb[20].mxu0 }
 0x40b   : > { %v1013_v41 = vadd.f32 %v1012_v40, %v998_v36  ;;  %v1349_v42 = vpop.f32.mrb[21].mxu0 }
 0x40c   : > { %v1001_v43 = vpop.f32.mrb[22].mxu0 }
 0x40d   : > { %1015 = vst.msk [vmem:[#allocation4] sm:$0xff] %vm554_vm4, %v1013_v41  ;;  %v1350_v13 = vpop.f32.mrb[23].mxu0 }
 0x414   : > { %v1019_v44 = vld [vmem:[#allocation4] sm:$0xff] }
 0x415   : > { %vm1020_vm5 = vcmp.eq.f32.partialorder %v1019_v44, 0.0 }
 0x416   : > { %v1021_v21 = vsel %vm1020_vm5, 1.0, %v1019_v44 }
 0x417   : > { %1425 = vrcp.f32 %v1021_v21 }
 0x421   : > { %v1426_v27 = vpop.eup %1425 }
 0x422   : > { %1025 = vperm.xlu1 %1413, %v1426_v27  }
 0x4a1   : > { %v1026_v45 = vpop.permute.xlu1 %1025 }
 0x4a2   : > { %v1028_v46 = vmul.f32 %v1026_v45, %v1019_v44 }
 0x4a4   : > { %v1029_v47 = vsel %vm505_vm1, %v1028_v46, 0.0 }
 0x4a5   : > { %1030 = vadd.xlane.f32.xlu1 %v1029_v47 }
 0x532   : > { %v1031_v48 = vpop.xlane.xlu1 %1030 }
 0x533   : > { %v1033_v49 = vmul.f32 0.03125, %v1031_v48 }
 0x535   : > { %v1034_v50 = vsub.f32 %v1028_v46, %v1033_v49 }
 0x537   : > { %v1035_v51 = vmul.f32 %v1034_v50, %v1034_v50 }
 0x539   : > { %v1036_v52 = vsel %vm505_vm1, %v1035_v51, 0.0 }
 0x53a   : > { %1037 = vadd.xlane.f32.xlu1 %v1036_v52 }
 0x5c7   : > { %v1038_v53 = vpop.xlane.xlu1 %1037 }
 0x5c8   : > { %v1039_v54 = vmul.f32 0.03125, %v1038_v53 }
 0x5ca   : > { %v1040_v55 = vadd.f32 1e-05, %v1039_v54 }
 0x5cc   : > { %1427 = vrsqrt.f32 %v1040_v55 }
 0x5d6   : > { %v1428_v56 = vpop.eup %1427 }
 0x5d7   : > { %v1042_v58 = vmul.f32 %v1428_v56, %v1034_v50 }
 0x5d9   : > { %v1050_v60 = vmul.f32 %v1215_v57, %v1042_v58 }
 0x5db   : > { %v1058_v61 = vadd.f32 %v1216_v59, %v1050_v60 }
 0x5dd   : > { %1059 = vst.msk [vmem:[%s451_s12] sm:$0xff] %vm505_vm1, %v1058_v61 }
 0x5de   : > { %1442 = shalt.err (!%p1439_p5)
}
 0x5df   : > { %s1443_s0 = scalar_lea.hbm %s1803_s1, 128  ;;  %s1447_s28 = scalar_lea.hbm %s1862_s11, 256 }
 0x5e0   : > { %p1444_p6 = scmp.ne.s32.totalorder %s1803_s1, %s1443_s0  ;;  %p1448_p10 = scmp.lt.u32.totalorder %s1803_s1, %s1862_s11 }
 0x5e1   : > { %p1449_p11 = scmp.lt.u32.totalorder %s1447_s28, %s1443_s0  ;;  %p1451_p13 = scmp.lt.u32.totalorder %s1443_s0, %s1803_s1 }
 0x5e2   : > { %p1445_p7 = pnand %p1444_p6, %p1615_p4 }
 0x5e3   : > { %p1450_p12 = por %p1449_p11, %p1448_p10 }
 0x5e4   : > { %p1446_p9 = pneg %p1445_p7 }
 0x5e5   : > { %p1452_p0 = por %p1451_p13, %p1450_p12 }
 0x5e7   : > { %p1453_p1 = pnand %p1452_p0, %p1446_p9 }
 0x5e9   : > { %1456 = shalt.err (!%p1453_p1)
}
 0x5ea   : > { %1351 = dma.vmem_to_hbm [thread:$0]  (%p1615_p4), %s1805_s16, 128, %s1803_s1, %s1061_s15  }
 0x5eb PF: > { %p1357_p2 = scmp.ge.s32.totalorder %s1507_s22, 2  ;;  %s1087_s23 = sand.u32 1, %s1487_s17  }
 0x5ec   : > { %s1088_s20 = scalar_lea.sflag [#allocation6], %s1087_s23 }
 0x5ed   : > { %p1354_p3 = pnand %p1357_p2, %p1622_p8 }
 0x5ef   : > { %1482 = dma.done.wait (!%p1354_p3), %s1088_s20, 128  }
 0x5f0   : > { %1484 = vsyncadd (!%p1354_p3), %s1088_s20, 4294967168  ;;  %s24_s22 = sadd.s32 1, %s1507_s22   ;;  %s1871_s17 = smov %s1491_s18 }
 0x5f1   : > { %p21_p5 = scmp.ge.s32.totalorder %s24_s22, 4   ;;  %s1872_s18 = smov %s1495_s19 }
 0x5f2   : > { %s1873_s19 = smov %s1628_s30  ;;  %s1874_s20 = smov %s1503_s21 }
 0x5f3   : > { %s1875_s21 = smov %s1877_s25  ;;  %23 = sbr.rel (!%p21_p5) target bundleno = 8 (0x8), region = 113 }
 0x5fa   :  { %1093 = vsyncpa [#allocation6], 1 }
 0x5fb   :  { %1095 = vsyncpa [#allocation6 + $0x1], 1 }

</bundles_post_ra>
